<compile_context>
chip_gen: v7x
topology: tpu7x:2x2x1
jax: 0.10.0
libtpu: 0.0.40
codegen_flags: <defaults>
</compile_context>

<pallas_src>
import functools

import jax
import jax.numpy as jnp
from jax.experimental import pallas as pl
from jax.experimental.pallas import tpu as pltpu

LANES = 128
SUBLANES = 8


def _round_up(x, m):
    return (x + m - 1) // m * m


def _tensorcores_per_chip():
    """2 on dual-TensorCore chips (v7x / v5p / v4), else 1 (v5e / v6e)."""
    try:
        kind = jax.devices()[0].device_kind.lower()
    except Exception:  # noqa: BLE001 - best-effort detection only
        return 1
    for tag in ("v7", "7x", "v5p", "v4"):
        if tag in kind:
            return 2
    return 1


def _default_tile_rows():
    """Streaming tile height: 4096 on v5e (16 MiB scoped default), else 8192."""
    try:
        kind = jax.devices()[0].device_kind.lower()
    except Exception:  # noqa: BLE001
        kind = ""
    if "v5e" in kind or "v5 lite" in kind or "v5lite" in kind:
        return 4096
    return 8192


def _focal_loss_kernel(x_ref, t_ref, o_ref, *, gamma, exact_pt, n_rows,
                       tile_rows, tiles_per_core, all_tiles_full):
    core = pl.program_id(0)
    step = pl.program_id(1)

    @pl.when(step == 0)
    def _():
        o_ref[...] = jnp.zeros_like(o_ref)

    def accumulate(rem_rows):
        p = x_ref[...].astype(jnp.float32)
        tgt = t_ref[...].astype(jnp.float32)
        if rem_rows is not None:
            # Only the partial / clamped out-of-range tiles take this path.
            # Compare the intra-tile row index against the remaining-row scalar
            # (stays well inside int32 for any realistic element count).
            row = jax.lax.broadcasted_iota(jnp.int32, (tile_rows, LANES), 0)
            valid = row < rem_rows
            # Loss-neutral fill: p=1, t=1 -> bce=0 -> contribution 0.
            p = jnp.where(valid, p, 1.0)
            tgt = jnp.where(valid, tgt, 1.0)

        if exact_pt:
            # Literal torch semantics: per-term clamped logs, pt = exp(-bce).
            log_p = jnp.maximum(jnp.log(p), -100.0)
            log_1mp = jnp.maximum(jnp.log(1.0 - p), -100.0)
            bce = -(tgt * log_p + (1.0 - tgt) * log_1mp)
            pt = jnp.exp(-bce)
        else:
            # Hard {0,1} targets: pt = t*p + (1-t)*(1-p) equals exp(-bce), and a
            # single clamped log recovers bce.  One EUP op/element instead of 2-3.
            pt = tgt * p + (1.0 - tgt) * (1.0 - p)
            bce = -jnp.maximum(jnp.log(pt), -100.0)

        one_minus_pt = 1.0 - pt
        g = float(gamma)
        if g == 2.0:
            mod = one_minus_pt * one_minus_pt
        elif g == 1.0:
            mod = one_minus_pt
        elif g == 0.0:
            mod = jnp.ones_like(one_minus_pt)
        elif g > 0.0 and g == int(g) and g <= 8.0:
            mod = one_minus_pt
            for _ in range(int(g) - 1):
                mod = mod * one_minus_pt
        else:
            mod = jnp.power(one_minus_pt, g)

        # alpha is applied once to the final scalar in the wrapper.
        contrib = mod * bce
        # (tile_rows,128)->(tile_rows//8,8,128) is a free sublane regrouping; the
        # axis-0 sum is pure VPU vreg adds into the lane-dense (8,128) accumulator.
        o_ref[...] += jnp.sum(
            contrib.reshape(tile_rows // SUBLANES, SUBLANES, LANES), axis=0)

    if all_tiles_full:
        # Every tile is statically full: emit only the unmasked fast path.
        accumulate(None)
    else:
        rem_rows = n_rows - (core * tiles_per_core + step) * tile_rows

        @pl.when(rem_rows >= tile_rows)
        def _():
            accumulate(None)

        @pl.when(rem_rows < tile_rows)
        def _():
            accumulate(rem_rows)


def focal_loss(inputs, targets, alpha=0.25, gamma=2, reduction="mean",
               tile_rows=None, exact_pt=False, num_cores=None):
    """Focal loss. inputs/targets: same shape; inputs are probabilities in (0,1).

    NOTE: the default fast path (exact_pt=False) uses pt = t*p + (1-t)*(1-p) and
    bce = -max(log(pt), -100), which matches torch's F.binary_cross_entropy-based
    focal loss exactly for hard {0,1} targets.  For soft targets pass
    exact_pt=True (literal two-log / exp(-bce) semantics).
    """
    assert inputs.shape == targets.shape
    if reduction not in ("mean", "sum"):
        # TODO(synk): reduction='none' needs an elementwise-output kernel; only 'mean'/'sum' here.
        raise NotImplementedError("reduction must be 'mean' or 'sum'")

    n_elements = int(inputs.size)
    x_flat = inputs.reshape(-1)
    t_flat = targets.reshape(-1)

    n_rows = n_elements // LANES
    n_main = n_rows * LANES

    total = jnp.float32(0.0)

    if n_rows > 0:
        if n_main == n_elements:
            x2d = x_flat.reshape(n_rows, LANES)       # pure copy-free reshape
            t2d = t_flat.reshape(n_rows, LANES)
        else:
            # 128-divisible prefix only (no padded copy of both full inputs);
            # the <128-element tail is handled below in plain JAX.
            x2d = x_flat[:n_main].reshape(n_rows, LANES)
            t2d = t_flat[:n_main].reshape(n_rows, LANES)

        if num_cores is None:
            num_cores = _tensorcores_per_chip()
        if tile_rows is None:
            tile_rows = _default_tile_rows()

        # Multiple of 16 so bf16 inputs keep their native (16,128) tiling; capped
        # for small inputs.
        tile_rows_eff = min(int(tile_rows), _round_up(n_rows, 16))
        tile_rows_eff = max(16, _round_up(tile_rows_eff, 16))

        n_tiles = -(-n_rows // tile_rows_eff)
        num_cores = max(1, min(int(num_cores), n_tiles))
        tiles_per_core = -(-n_tiles // num_cores)
        all_tiles_full = (n_rows % tile_rows_eff == 0
                          and num_cores * tiles_per_core == n_tiles)

        if num_cores * tiles_per_core == n_tiles:
            def in_index_map(c, t):
                return (c * tiles_per_core + t, 0)
        else:
            def in_index_map(c, t):
                # Out-of-range trailing steps (fully masked in-kernel) re-read the
                # last tile so the DMA stays in bounds.
                return (jnp.minimum(c * tiles_per_core + t, n_tiles - 1), 0)

        kernel = functools.partial(
            _focal_loss_kernel,
            gamma=float(gamma), exact_pt=bool(exact_pt),
            n_rows=int(n_rows), tile_rows=int(tile_rows_eff),
            tiles_per_core=int(tiles_per_core),
            all_tiles_full=bool(all_tiles_full),
        )

        # Scoped-VMEM request sized to the real footprint: 2 pipeline buffers per
        # input tile + per-core output blocks + margin.  Never below the smallest
        # generation default; ~18 MiB at 8192 f32 rows (fits v7x 64 MiB physical).
        tile_bytes = tile_rows_eff * LANES * (
            jnp.dtype(inputs.dtype).itemsize + jnp.dtype(targets.dtype).itemsize)
        vmem_bytes = 2 * tile_bytes + num_cores * SUBLANES * LANES * 4 + (2 << 20)
        vmem_bytes = max(int(vmem_bytes), 16 << 20)

        partials = pl.pallas_call(
            kernel,
            out_shape=jax.ShapeDtypeStruct((num_cores * SUBLANES, LANES), jnp.float32),
            grid_spec=pltpu.PrefetchScalarGridSpec(
                num_scalar_prefetch=0,
                grid=(num_cores, tiles_per_core),
                in_specs=[
                    pl.BlockSpec((tile_rows_eff, LANES), in_index_map),
                    pl.BlockSpec((tile_rows_eff, LANES), in_index_map),
                ],
                # Lane-dense (8,128) partial-sum block per core, revisited across
                # the reduction axis (acts as the accumulator).
                out_specs=pl.BlockSpec((SUBLANES, LANES), lambda c, t: (c, 0)),
            ),
            compiler_params=pltpu.CompilerParams(
                # Leading axis shards across the two TensorCores on v7x/v5p/v4;
                # it is size 1 (no-op) on single-TC chips.
                dimension_semantics=("parallel", "arbitrary"),
                vmem_limit_bytes=vmem_bytes,
            ),
        )(x2d, t2d)
        total = total + jnp.sum(partials)

    # <128-element ragged tail in plain JAX (literal torch semantics; cheap).
    if n_main != n_elements:
        p = x_flat[n_main:].astype(jnp.float32)
        t = t_flat[n_main:].astype(jnp.float32)
        bce = -(t * jnp.maximum(jnp.log(p), -100.0)
                + (1.0 - t) * jnp.maximum(jnp.log(1.0 - p), -100.0))
        pt = jnp.exp(-bce)
        total = total + jnp.sum((1.0 - pt) ** gamma * bce)

    total = jnp.float32(alpha) * total
    if reduction == "mean":
        return total / jnp.float32(n_elements)
    return total


def focal_loss_ref(inputs, targets, alpha=0.25, gamma=2):
    """Pure-JAX reference with literal torch semantics (clamped logs, pt=exp(-bce))."""
    p = inputs.astype(jnp.float32)
    t = targets.astype(jnp.float32)
    bce = -(t * jnp.maximum(jnp.log(p), -100.0)
            + (1.0 - t) * jnp.maximum(jnp.log(1.0 - p), -100.0))
    pt = jnp.exp(-bce)
    return jnp.mean(alpha * (1.0 - pt) ** gamma * bce)


if __name__ == "__main__":
    key = jax.random.PRNGKey(0)
    k1, k2 = jax.random.split(key)

    # Small segmentation-style head: (N, C, H, W) probabilities, binary targets.
    shape = (2, 4, 16, 16)
    inputs = jax.nn.sigmoid(jax.random.normal(k1, shape, dtype=jnp.float32))
    targets = (jax.random.uniform(k2, shape, dtype=jnp.float32) > 0.5).astype(jnp.float32)

    loss = jax.block_until_ready(focal_loss(inputs, targets, alpha=0.25, gamma=2))
    ref = focal_loss_ref(inputs, targets, alpha=0.25, gamma=2)
    assert jnp.allclose(loss, ref, rtol=1e-5, atol=1e-6), (loss, ref)

    # exact_pt path (literal two-log / exp(-bce) semantics).
    loss_exact = jax.block_until_ready(focal_loss(inputs, targets, exact_pt=True))
    assert jnp.allclose(loss_exact, ref, rtol=1e-5, atol=1e-6), (loss_exact, ref)

    # 'sum' reduction.
    loss_sum = jax.block_until_ready(focal_loss(inputs, targets, reduction="sum"))
    ref_sum = ref * inputs.size
    assert jnp.allclose(loss_sum, ref_sum, rtol=1e-5, atol=1e-4), (loss_sum, ref_sum)

    # bf16 inputs (halves HBM bytes; cast to f32 in-kernel).
    x_bf16 = inputs.astype(jnp.bfloat16)
    t_bf16 = targets.astype(jnp.bfloat16)
    loss_bf16 = jax.block_until_ready(focal_loss(x_bf16, t_bf16))
    ref_bf16 = focal_loss_ref(x_bf16, t_bf16)
    assert jnp.allclose(loss_bf16, ref_bf16, rtol=1e-4, atol=1e-6), (loss_bf16, ref_bf16)

    # Non-128-divisible, multi-tile, odd tile count: prefix slice + JAX tail +
    # in-kernel partial-tile mask (+ clamped index map on dual-TC chips).
    shape2 = (3, 5, 17, 19)  # 4845 elements
    k3, k4 = jax.random.split(k2)
    x2 = jax.nn.sigmoid(jax.random.normal(k3, shape2, dtype=jnp.float32))
    t2 = (jax.random.uniform(k4, shape2, dtype=jnp.float32) > 0.5).astype(jnp.float32)
    loss2 = jax.block_until_ready(focal_loss(x2, t2, tile_rows=16))
    ref2 = focal_loss_ref(x2, t2)
    assert jnp.allclose(loss2, ref2, rtol=1e-5, atol=1e-6), (loss2, ref2)

    # Tiny (<128 element) input: pure-JAX tail path only (no kernel launch).
    shape3 = (2, 3, 4, 5)  # 120 elements
    k5, k6 = jax.random.split(k4)
    x3 = jax.nn.sigmoid(jax.random.normal(k5, shape3, dtype=jnp.float32))
    t3 = (jax.random.uniform(k6, shape3, dtype=jnp.float32) > 0.5).astype(jnp.float32)
    loss3 = jax.block_until_ready(focal_loss(x3, t3))
    ref3 = focal_loss_ref(x3, t3)
    assert jnp.allclose(loss3, ref3, rtol=1e-5, atol=1e-6), (loss3, ref3)

    print("KERNEL_OK")
</pallas_src>

<mosaic_0001>
module attributes {stable_mosaic.version = 11 : i64} {
  func.func @_focal_loss_kernel(%arg0: i32, %arg1: i32, %arg2: memref<16x128xf32, #tpu.memory_space<vmem>>, %arg3: memref<16x128xf32, #tpu.memory_space<vmem>>, %arg4: memref<8x128xf32, #tpu.memory_space<vmem>>) attributes {dimension_semantics = [#tpu.dimension_semantics<parallel>, #tpu.dimension_semantics<arbitrary>], iteration_bounds = array<i64: 1, 1>, scalar_prefetch = 0 : i64, scratch_operands = 0 : i64, tpu.core_type = #tpu.core_type<tc>, window_params = [{transform_indices = @transform_0, window_bounds = array<i64: 16, 128>}, {transform_indices = @transform_1, window_bounds = array<i64: 16, 128>}, {transform_indices = @transform_2, window_bounds = array<i64: 8, 128>}]} {
    %c0_i32 = arith.constant 0 : i32
    %0 = arith.cmpi eq, %arg1, %c0_i32 : i32
    %1 = arith.extui %0 : i1 to i32
    %c0_i32_0 = arith.constant 0 : i32
    %2 = arith.cmpi ne, %1, %c0_i32_0 : i32
    scf.if %2 {
      %cst_13 = arith.constant 0.000000e+00 : f32
      %26 = vector.broadcast %cst_13 : f32 to vector<8x128xf32>
      %c0_14 = arith.constant 0 : index
      %c0_15 = arith.constant 0 : index
      %27 = vector.load %arg4[%c0_14, %c0_15] : memref<8x128xf32, #tpu.memory_space<vmem>>, vector<8x128xf32>
      tpu.vector_store %arg4[%c0_14, %c0_15], %26 {strides = array<i32>} : memref<8x128xf32, #tpu.memory_space<vmem>>, vector<8x128xf32>,
    } else {
    }
    %c0 = arith.constant 0 : index
    %c0_1 = arith.constant 0 : index
    %3 = vector.load %arg2[%c0, %c0_1] : memref<16x128xf32, #tpu.memory_space<vmem>>, vector<16x128xf32>
    %c0_2 = arith.constant 0 : index
    %c0_3 = arith.constant 0 : index
    %4 = vector.load %arg3[%c0_2, %c0_3] : memref<16x128xf32, #tpu.memory_space<vmem>>, vector<16x128xf32>
    %5 = arith.mulf %4, %3 : vector<16x128xf32>
    %cst = arith.constant 1.000000e+00 : f32
    %6 = vector.broadcast %cst : f32 to vector<16x128xf32>
    %7 = arith.subf %6, %4 : vector<16x128xf32>
    %cst_4 = arith.constant 1.000000e+00 : f32
    %8 = vector.broadcast %cst_4 : f32 to vector<16x128xf32>
    %9 = arith.subf %8, %3 : vector<16x128xf32>
    %10 = arith.mulf %7, %9 : vector<16x128xf32>
    %11 = arith.addf %5, %10 : vector<16x128xf32>
    %12 = math.log %11 : vector<16x128xf32>
    %cst_5 = arith.constant -1.000000e+02 : f32
    %13 = vector.broadcast %cst_5 : f32 to vector<16x128xf32>
    %14 = arith.maximumf %12, %13 : vector<16x128xf32>
    %cst_6 = arith.constant 0.000000e+00 : f32
    %15 = vector.broadcast %cst_6 : f32 to vector<16x128xf32>
    %16 = arith.subf %15, %14 : vector<16x128xf32>
    %cst_7 = arith.constant 1.000000e+00 : f32
    %17 = vector.broadcast %cst_7 : f32 to vector<16x128xf32>
    %18 = arith.subf %17, %11 : vector<16x128xf32>
    %19 = arith.mulf %18, %18 : vector<16x128xf32>
    %20 = arith.mulf %19, %16 : vector<16x128xf32>
    %c0_8 = arith.constant 0 : index
    %c0_9 = arith.constant 0 : index
    %21 = vector.load %arg4[%c0_8, %c0_9] : memref<8x128xf32, #tpu.memory_space<vmem>>, vector<8x128xf32>
    %22 = vector.shape_cast %20 : vector<16x128xf32> to vector<2x8x128xf32>
    %cst_10 = arith.constant dense<0.000000e+00> : vector<8x128xf32>
    %23 = vector.multi_reduction <add>, %22, %cst_10 [0] : vector<2x8x128xf32> to vector<8x128xf32>
    %24 = arith.addf %21, %23 : vector<8x128xf32>
    %c0_11 = arith.constant 0 : index
    %c0_12 = arith.constant 0 : index
    %25 = vector.load %arg4[%c0_11, %c0_12] : memref<8x128xf32, #tpu.memory_space<vmem>>, vector<8x128xf32>
    tpu.vector_store %arg4[%c0_11, %c0_12], %24 {strides = array<i32>} : memref<8x128xf32, #tpu.memory_space<vmem>>, vector<8x128xf32>,
    return
  }
  func.func @transform_0(%arg0: i32, %arg1: i32) -> (i32, i32) {
    %c1_i32 = arith.constant 1 : i32
    %0 = arith.muli %arg0, %c1_i32 : i32
    %1 = arith.addi %0, %arg1 : i32
    %c0_i32 = arith.constant 0 : i32
    %c0_i32_0 = arith.constant 0 : i32
    return %1, %c0_i32 : i32, i32
  }
  func.func @transform_1(%arg0: i32, %arg1: i32) -> (i32, i32) {
    %c1_i32 = arith.constant 1 : i32
    %0 = arith.muli %arg0, %c1_i32 : i32
    %1 = arith.addi %0, %arg1 : i32
    %c0_i32 = arith.constant 0 : i32
    %c0_i32_0 = arith.constant 0 : i32
    return %1, %c0_i32 : i32, i32
  }
  func.func @transform_2(%arg0: i32, %arg1: i32) -> (i32, i32) {
    %c0_i32 = arith.constant 0 : i32
    %c0_i32_0 = arith.constant 0 : i32
    return %arg0, %c0_i32 : i32, i32
  }
}

</mosaic_0001>

<bundles_post_ra>
// kernel: tpu_custom_call.1
= control target key start
LH: loop header
LB: loop body
LE: loop exit
PB: predicated region body
PF: predicated region fallthrough
CT: control target
= control target key end

     0   :  { %7 = vsyncpa [#allocation3], 0  ;;  %s243_s0 = inlined_call_operand.hbm [shape: f32[16,128], index: 0, kind: input, shape index: {}]   ;;  %s244_s1 = inlined_call_operand.hbm [shape: f32[16,128], index: 1, kind: input, shape index: {}]   ;;  %s245_s2 = inlined_call_operand.hbm [shape: f32[8,128], index: 2, kind: output, shape index: {}]  }
   0x1   :  { %8 = vsyncpa [#allocation6], 0 }
   0x2   :  { %9 = vsyncpa [#allocation4], 0  ;;  %s187_s9 = smov [#allocation2]   ;;  %s115_s13 = scalar_lea.hbm %s243_s0, 256 }
   0x3   :  { %s19_s10 = sshll.u32 %s187_s9, 4  ;;  %p116_p0 = scmp.ne.s32.totalorder %s243_s0, %s115_s13  ;;  %s20_s10 = int_to_ptr.vmem [resolvable:$true] %s19_s10 }
   0x4   :  { %p119_p1 = scmp.lt.u32.totalorder %s115_s13, %s243_s0 }
   0x6   :  { %p121_p2 = pnand %p119_p1, %p116_p0 }
   0x8   :  { %124 = shalt.err (!%p121_p2)
}
   0x9   :  { %s125_s18 = scalar_lea.vmem %s20_s10, 256  ;;  %p130_p4 = scmp.lt.s32.totalorder %s20_s10, %s20_s10 }
   0xa   :  { %p126_p3 = scmp.ne.s32.totalorder %s20_s10, %s125_s18  ;;  %p131_p5 = scmp.lt.s32.totalorder %s125_s18, %s125_s18 }
   0xc   :  { %p132_p6 = por %p131_p5, %p130_p4 }
   0xe   :  { %p133_p7 = pnand %p132_p6, %p126_p3 }
  0x10   :  { %136 = shalt.err (!%p133_p7)
}
  0x11   :  { %s188_s19 = smov 128   ;;  %s189_s20 = smov 8  }
  0x12   :  { %25 = dma.hbm_to_vmem [thread:$0]  %s243_s0, 256, %s20_s10, [#allocation3], %s188_s19, %s188_s19, %s189_s20  }
  0x13   :  { %s190_s23 = smov [#allocation5]   ;;  %s137_s27 = scalar_lea.hbm %s244_s1, 256 }
  0x14   :  { %s35_s24 = sshll.u32 %s190_s23, 4  ;;  %p138_p8 = scmp.ne.s32.totalorder %s244_s1, %s137_s27  ;;  %s36_s24 = int_to_ptr.vmem [resolvable:$true] %s35_s24 }
  0x15   :  { %p141_p9 = scmp.lt.u32.totalorder %s137_s27, %s244_s1 }
  0x17   :  { %p143_p10 = pnand %p141_p9, %p138_p8 }
  0x19   :  { %146 = shalt.err (!%p143_p10)
}
  0x1a   :  { %s147_s4 = scalar_lea.vmem %s36_s24, 256  ;;  %p152_p12 = scmp.lt.s32.totalorder %s36_s24, %s36_s24 }
  0x1b   :  { %p148_p11 = scmp.ne.s32.totalorder %s36_s24, %s147_s4  ;;  %p153_p13 = scmp.lt.s32.totalorder %s147_s4, %s147_s4 }
  0x1d   :  { %p154_p0 = por %p153_p13, %p152_p12 }
  0x1f   :  { %p155_p1 = pnand %p154_p0, %p148_p11 }
  0x21   :  { %158 = shalt.err (!%p155_p1)
}
  0x22   :  { %41 = dma.hbm_to_vmem [thread:$0]  %s244_s1, 256, %s36_s24, [#allocation6], %s188_s19, %s188_s19, %s189_s20  }
  0x23   :  { %181 = dma.done.wait [#allocation3], 256  }
  0x24   :  { %182 = vsyncadd [#allocation3], 4294967040 }
  0x25   :  { %183 = dma.done.wait [#allocation6], 256  }
  0x26   :  { %184 = vsyncadd [#allocation6], 4294967040  ;;  %v57_v0 = vld [vmem:[#allocation2] sm:$0xff]  ;;  %v58_v1 = vld [vmem:[#allocation2 + $0x8] sm:$0xff]  ;;  %s191_s1 = smov [#allocation7]  }
  0x27   :  { %v59_v2 = vld [vmem:[#allocation5] sm:$0xff]  ;;  %v60_v3 = vld [vmem:[#allocation5 + $0x8] sm:$0xff]  ;;  %v65_v6 = vsub.f32 1.0, %v57_v0  ;;  %v66_v7 = vsub.f32 1.0, %v58_v1  ;;  %s95_s6 = sshll.u32 %s191_s1, 4  ;;  %s96_s6 = int_to_ptr.vmem [resolvable:$true] %s95_s6 }
  0x28   :  { %v61_v4 = vmul.f32 %v59_v2, %v57_v0  ;;  %v63_v5 = vsub.f32 1.0, %v59_v2  ;;  %v62_v8 = vmul.f32 %v60_v3, %v58_v1  ;;  %v64_v9 = vsub.f32 1.0, %v60_v3  ;;  %s159_s7 = scalar_lea.vmem %s96_s6, 128  ;;  %p164_p3 = scmp.lt.s32.totalorder %s96_s6, %s96_s6 }
  0x29   :  { %p160_p2 = scmp.ne.s32.totalorder %s96_s6, %s159_s7  ;;  %p165_p4 = scmp.lt.s32.totalorder %s159_s7, %s159_s7 }
  0x2a   :  { %v67_v10 = vmul.f32 %v65_v6, %v63_v5  ;;  %v68_v11 = vmul.f32 %v66_v7, %v64_v9 }
  0x2b   :  { %p166_p5 = por %p165_p4, %p164_p3 }
  0x2c   :  { %v69_v12 = vadd.f32 %v67_v10, %v61_v4  ;;  %v70_v13 = vadd.f32 %v68_v11, %v62_v8 }
  0x2d   :  { %p167_p6 = pnand %p166_p5, %p160_p2 }
  0x2e   :  { %111 = vlog2.f32 %v69_v12  ;;  %v79_v14 = vsub.f32 1.0, %v69_v12  ;;  %v80_v16 = vsub.f32 1.0, %v70_v13 }
  0x2f   :  { %113 = vlog2.f32 %v70_v13 }
  0x30   :  { %v81_v21 = vmul.f32 %v79_v14, %v79_v14  ;;  %v82_v23 = vmul.f32 %v80_v16, %v80_v16 }
  0x38   :  { %v112_v15 = vpop.eup %111 }
  0x39   :  { %v114_v17 = vpop.eup %113  ;;  %v72_v18 = vmul.f32 0.6931472, %v112_v15 }
  0x3a   :  { %v74_v19 = vmul.f32 0.6931472, %v114_v17 }
  0x3b   :  { %v75_v20 = vmax.f32 %v72_v18, -100.0 }
  0x3c   :  { %v76_v22 = vmax.f32 %v74_v19, -100.0 }
  0x3d   :  { %v77_v24 = vsub.f32 0.0, %v75_v20 }
  0x3e   :  { %v78_v25 = vsub.f32 0.0, %v76_v22 }
  0x3f   :  { %v83_v26 = vmul.f32 %v81_v21, %v77_v24 }
  0x40   :  { %v84_v27 = vmul.f32 %v82_v23, %v78_v25 }
  0x42   :  { %v86_v28 = vadd.f32 %v84_v27, %v83_v26 }
  0x44   :  { %88 = vst [vmem:[#allocation7] sm:$0xff] %v86_v28 }
  0x45   :  { %170 = shalt.err (!%p167_p6)
}
  0x46   :  { %s171_s10 = scalar_lea.hbm %s245_s2, 128 }
  0x47   :  { %p172_p7 = scmp.ne.s32.totalorder %s245_s2, %s171_s10  ;;  %p175_p8 = scmp.lt.u32.totalorder %s171_s10, %s245_s2 }
  0x49   :  { %p177_p9 = pnand %p175_p8, %p172_p7 }
  0x4b   :  { %180 = shalt.err (!%p177_p9)
}
  0x4c   :  { %98 = dma.vmem_to_hbm [thread:$0]  %s96_s6, 128, %s245_s2, [#allocation4]  }
  0x4d   :  { %185 = dma.done.wait [#allocation4], 128  }
  0x4e   :  { %186 = vsyncadd [#allocation4], 4294967168 }
  0x4f   :  { %102 = vsyncpa [#allocation3], 1 }
  0x50   :  { %103 = vsyncpa [#allocation6], 1 }
  0x51   :  { %104 = vsyncpa [#allocation4], 1 }

</bundles_post_ra>
